<compile_context>
chip_gen: v7x
topology: tpu7x:2x2x1
jax: 0.10.0
libtpu: 0.0.40
codegen_flags: <defaults>
</compile_context>

<pallas_src>
import functools

import jax
import jax.numpy as jnp
from jax.experimental import pallas as pl
from jax.experimental.pallas import tpu as pltpu


_VMEM_BUDGET = 40 * 1024 * 1024      # conservative residency target (fits v7x 64 MiB)
_VMEM_LIMIT_MAX = 56 * 1024 * 1024   # scoped-VMEM request ceiling (under v7x physical)


def _round_up(v, m):
    return ((v + m - 1) // m) * m


def plan_maxout(in_feature, out_feature, pool_size, *, w_dtype=jnp.bfloat16):
    """Static blocking plan (independent of batch size)."""
    K, O, P = in_feature, out_feature, pool_size
    o_pad = _round_up(O, 128)                       # lane-dense pool slices
    w_itemsize = jnp.dtype(w_dtype).itemsize
    per_slice = 2 * K * o_pad * w_itemsize          # double-buffered by BlockSpec
    max_slices = max(1, (_VMEM_BUDGET // 3) // per_slice)
    s = int(min(P, max_slices))                     # pool slices per weight block
    n_blocks = -(-P // s)
    return {
        "o_pad": o_pad,
        "slices_per_block": s,
        "n_blocks": n_blocks,
        "pool_pad": n_blocks * s,
        "w_dtype": w_dtype,
    }


def pack_maxout_params(weight, bias, out_feature, pool_size, plan):
    """Pre-pack torch-layout params once (hoisted out of the per-call path).

    torch layout: weight (O*P, K), bias (O*P,), linear-output column = o*P + p.
    Packed layout: w_packed (K, pool_pad*o_pad) bf16 with column p*o_pad + o,
    b_packed (1, pool_pad*o_pad) f32.  Lane padding (o >= O) gets zero weight /
    zero bias; whole padding slices (p >= P) get bias = -inf so they never win
    the max.
    """
    O, P = out_feature, pool_size
    K = weight.shape[1]
    o_pad, pool_pad, w_dtype = plan["o_pad"], plan["pool_pad"], plan["w_dtype"]

    wT = weight.T.reshape(K, O, P).transpose(0, 2, 1)        # (K, P, O): [k, p, o]
    bT = bias.reshape(O, P).T                                # (P, O)

    w_full = jnp.zeros((K, pool_pad, o_pad), w_dtype)
    w_full = w_full.at[:, :P, :O].set(wT.astype(w_dtype))

    b_full = jnp.zeros((pool_pad, o_pad), jnp.float32)
    b_full = b_full.at[:P, :O].set(bT.astype(jnp.float32))
    if pool_pad > P:
        b_full = b_full.at[P:, :].set(-jnp.inf)

    return (w_full.reshape(K, pool_pad * o_pad),
            b_full.reshape(1, pool_pad * o_pad))


def _maxout_kernel(x_ref, w_ref, b_ref, o_ref, acc_ref, *, o_pad, slices_per_block):
    # x_ref: (TB, K)  w_ref: (K, S*o_pad) bf16  b_ref: (1, S*o_pad) f32
    # o_ref: (TB, o_pad)  acc_ref: (TB, o_pad) f32 scratch
    n = pl.program_id(1)

    # One lane-dense MXU matmul per weight block: bf16 operands, f32 accumulation.
    y = jnp.dot(x_ref[...].astype(jnp.bfloat16), w_ref[...],
                preferred_element_type=jnp.float32)
    y = y + b_ref[...]                                       # (1, S*o_pad) broadcast, f32

    # Max over the pool slices in this block: 128-aligned static lane slices.
    m = y[:, 0:o_pad]
    for s in range(1, slices_per_block):
        m = jnp.maximum(m, y[:, s * o_pad:(s + 1) * o_pad])

    @pl.when(n == 0)
    def _():
        acc_ref[...] = m

    @pl.when(n != 0)
    def _():
        acc_ref[...] = jnp.maximum(acc_ref[...], m)

    @pl.when(n == pl.num_programs(1) - 1)
    def _():
        o_ref[...] = acc_ref[...].astype(o_ref.dtype)


def maxout_forward(x, w_packed, b_packed, out_feature, pool_size, plan):
    """x: (B, K); returns (B, out_feature) == torch linear(x).view(-1,O,P).max(2)[0]."""
    B, K = x.shape
    O = out_feature
    o_pad = plan["o_pad"]
    S = plan["slices_per_block"]
    n_blocks = plan["n_blocks"]
    n_cols = S * o_pad

    x_bytes = x.dtype.itemsize
    out_bytes = x.dtype.itemsize
    w_blk_bytes = 2 * K * n_cols * jnp.dtype(plan["w_dtype"]).itemsize
    b_blk_bytes = 2 * n_cols * 4

    def residency(tb):
        return (2 * tb * K * x_bytes            # x, double-buffered
                + 2 * tb * o_pad * out_bytes    # out, double-buffered
                + tb * o_pad * 4                # f32 max-accumulator scratch
                + w_blk_bytes + b_blk_bytes)    # weight + bias blocks

    # Batch tile: ~2 MiB of x per block (amortizes per-grid-step overhead), shrunk
    # until residency fits the per-generation VMEM budget.
    tb = max(8, _round_up(-(-(2 * 1024 * 1024) // (K * x_bytes)), 8))
    while tb > 8 and residency(tb) > _VMEM_BUDGET:
        tb = max(8, _round_up(tb // 2, 8))
    if tb >= B:
        tb = B                                  # single full-extent block (always legal)
        if B >= 16 and B * K * x_bytes >= (1 << 20):
            tb = _round_up(-(-B // 2), 8)       # >=2 tiles so both v7x TCs get work

    grid = (pl.cdiv(B, tb), n_blocks)           # ragged last batch tile masked by Pallas
    vmem_limit = int(min(_VMEM_LIMIT_MAX,
                         max(32 * 1024 * 1024, residency(tb) + (4 << 20))))

    kernel = functools.partial(_maxout_kernel, o_pad=o_pad, slices_per_block=S)

    out = pl.pallas_call(
        kernel,
        out_shape=jax.ShapeDtypeStruct((B, o_pad), x.dtype),
        grid_spec=pltpu.PrefetchScalarGridSpec(
            num_scalar_prefetch=0,
            grid=grid,
            in_specs=[
                pl.BlockSpec((tb, K), lambda i, n: (i, 0)),       # x: tiled over batch
                pl.BlockSpec((K, n_cols), lambda i, n: (0, n)),   # weight block
                pl.BlockSpec((1, n_cols), lambda i, n: (0, n)),   # bias block
            ],
            out_specs=pl.BlockSpec((tb, o_pad), lambda i, n: (i, 0)),
            scratch_shapes=[pltpu.VMEM((tb, o_pad), jnp.float32)],
        ),
        compiler_params=pltpu.CompilerParams(
            dimension_semantics=("parallel", "arbitrary"),
            vmem_limit_bytes=vmem_limit,
        ),
    )(x, w_packed, b_packed)

    if o_pad != O:
        out = out[:, :O]    # only present when O is not a 128-multiple
    return out


if __name__ == "__main__":
    # Small shapes consistent with the module.
    in_feature, out_feature, pool_size = 32, 16, 4
    batch = 8

    key = jax.random.PRNGKey(0)
    kx, kw, kb = jax.random.split(key, 3)

    # Deterministic "nn.Linear"-style init (uniform in +/- 1/sqrt(in_feature)).
    bound = 1.0 / (in_feature ** 0.5)
    weight = jax.random.uniform(kw, (out_feature * pool_size, in_feature),
                                minval=-bound, maxval=bound, dtype=jnp.float32)
    bias = jax.random.uniform(kb, (out_feature * pool_size,),
                              minval=-bound, maxval=bound, dtype=jnp.float32)
    x = jax.random.normal(kx, (batch, in_feature), dtype=jnp.float32)

    # Plan blocking + pre-pack params once (parameter-init time), then run.
    plan = plan_maxout(in_feature, out_feature, pool_size)
    w_packed, b_packed = pack_maxout_params(weight, bias, out_feature, pool_size, plan)

    out = maxout_forward(x, w_packed, b_packed, out_feature, pool_size, plan)
    out = jax.block_until_ready(out)

    # Pure-JAX reference mirroring the torch semantics.
    ref = (x @ weight.T + bias).reshape(-1, out_feature, pool_size).max(axis=2)
    assert out.shape == (batch, out_feature)
    # bf16 MXU operands (f32 accumulation) -> slightly looser tolerance than pure f32.
    assert jnp.allclose(out, ref, atol=2e-2, rtol=2e-2), float(jnp.max(jnp.abs(out - ref)))

    print("KERNEL_OK")
</pallas_src>

<mosaic_0001>
module attributes {stable_mosaic.version = 11 : i64} {
  func.func @_maxout_kernel(%arg0: i32, %arg1: i32, %arg2: memref<8x32xf32, #tpu.memory_space<vmem>>, %arg3: memref<32x512xbf16, #tpu.memory_space<vmem>>, %arg4: memref<1x512xf32, #tpu.memory_space<vmem>>, %arg5: memref<8x128xf32, #tpu.memory_space<vmem>>, %arg6: memref<8x128xf32, #tpu.memory_space<vmem>>) attributes {dimension_semantics = [#tpu.dimension_semantics<parallel>, #tpu.dimension_semantics<arbitrary>], iteration_bounds = array<i64: 1, 1>, scalar_prefetch = 0 : i64, scratch_operands = 1 : i64, tpu.core_type = #tpu.core_type<tc>, window_params = [{transform_indices = @transform_0, window_bounds = array<i64: 8, 32>}, {transform_indices = @transform_1, window_bounds = array<i64: 32, 512>}, {transform_indices = @transform_2, window_bounds = array<i64: 1, 512>}, {transform_indices = @transform_3, window_bounds = array<i64: 8, 128>}]} {
    %c0 = arith.constant 0 : index
    %c0_0 = arith.constant 0 : index
    %0 = vector.load %arg2[%c0, %c0_0] : memref<8x32xf32, #tpu.memory_space<vmem>>, vector<8x32xf32>
    %1 = arith.truncf %0 : vector<8x32xf32> to vector<8x32xbf16>
    %c0_1 = arith.constant 0 : index
    %c0_2 = arith.constant 0 : index
    %2 = vector.load %arg3[%c0_1, %c0_2] : memref<32x512xbf16, #tpu.memory_space<vmem>>, vector<32x512xbf16>
    %cst = arith.constant dense<0.000000e+00> : vector<8x512xf32>
    %3 = tpu.matmul %1, %2, %cst {dimension_numbers = #tpu.dot_dimension_numbers<[1], [0], [0], [1], [0, 0, 1, 1], [], []>} : vector<8x32xbf16>, vector<32x512xbf16>, vector<8x512xf32> -> vector<8x512xf32>
    %c0_3 = arith.constant 0 : index
    %c0_4 = arith.constant 0 : index
    %4 = vector.load %arg4[%c0_3, %c0_4] : memref<1x512xf32, #tpu.memory_space<vmem>>, vector<1x512xf32>
    %5 = vector.broadcast %4 : vector<1x512xf32> to vector<8x512xf32>
    %6 = arith.addf %3, %5 : vector<8x512xf32>
    %7 = vector.extract_strided_slice %6 {offsets = [0, 0], sizes = [8, 128], strides = [1, 1]} : vector<8x512xf32> to vector<8x128xf32>
    %8 = vector.extract_strided_slice %6 {offsets = [0, 128], sizes = [8, 128], strides = [1, 1]} : vector<8x512xf32> to vector<8x128xf32>
    %9 = arith.maximumf %7, %8 : vector<8x128xf32>
    %10 = vector.extract_strided_slice %6 {offsets = [0, 256], sizes = [8, 128], strides = [1, 1]} : vector<8x512xf32> to vector<8x128xf32>
    %11 = arith.maximumf %9, %10 : vector<8x128xf32>
    %12 = vector.extract_strided_slice %6 {offsets = [0, 384], sizes = [8, 128], strides = [1, 1]} : vector<8x512xf32> to vector<8x128xf32>
    %13 = arith.maximumf %11, %12 : vector<8x128xf32>
    %c0_i32 = arith.constant 0 : i32
    %14 = arith.cmpi eq, %arg1, %c0_i32 : i32
    %15 = arith.extui %14 : i1 to i32
    %c0_i32_5 = arith.constant 0 : i32
    %16 = arith.cmpi ne, %15, %c0_i32_5 : i32
    scf.if %16 {
      %c0_10 = arith.constant 0 : index
      %c0_11 = arith.constant 0 : index
      %23 = vector.load %arg6[%c0_10, %c0_11] : memref<8x128xf32, #tpu.memory_space<vmem>>, vector<8x128xf32>
      tpu.vector_store %arg6[%c0_10, %c0_11], %13 {strides = array<i32>} : memref<8x128xf32, #tpu.memory_space<vmem>>, vector<8x128xf32>,
    } else {
    }
    %c0_i32_6 = arith.constant 0 : i32
    %17 = arith.cmpi ne, %arg1, %c0_i32_6 : i32
    %18 = arith.extui %17 : i1 to i32
    %c0_i32_7 = arith.constant 0 : i32
    %19 = arith.cmpi ne, %18, %c0_i32_7 : i32
    scf.if %19 {
      %c0_10 = arith.constant 0 : index
      %c0_11 = arith.constant 0 : index
      %23 = vector.load %arg6[%c0_10, %c0_11] : memref<8x128xf32, #tpu.memory_space<vmem>>, vector<8x128xf32>
      %24 = arith.maximumf %23, %13 : vector<8x128xf32>
      %c0_12 = arith.constant 0 : index
      %c0_13 = arith.constant 0 : index
      %25 = vector.load %arg6[%c0_12, %c0_13] : memref<8x128xf32, #tpu.memory_space<vmem>>, vector<8x128xf32>
      tpu.vector_store %arg6[%c0_12, %c0_13], %24 {strides = array<i32>} : memref<8x128xf32, #tpu.memory_space<vmem>>, vector<8x128xf32>,
    } else {
    }
    %c0_i32_8 = arith.constant 0 : i32
    %20 = arith.cmpi eq, %arg1, %c0_i32_8 : i32
    %21 = arith.extui %20 : i1 to i32
    %c0_i32_9 = arith.constant 0 : i32
    %22 = arith.cmpi ne, %21, %c0_i32_9 : i32
    scf.if %22 {
      %c0_10 = arith.constant 0 : index
      %c0_11 = arith.constant 0 : index
      %23 = vector.load %arg6[%c0_10, %c0_11] : memref<8x128xf32, #tpu.memory_space<vmem>>, vector<8x128xf32>
      %c0_12 = arith.constant 0 : index
      %c0_13 = arith.constant 0 : index
      %24 = vector.load %arg5[%c0_12, %c0_13] : memref<8x128xf32, #tpu.memory_space<vmem>>, vector<8x128xf32>
      tpu.vector_store %arg5[%c0_12, %c0_13], %23 {strides = array<i32>} : memref<8x128xf32, #tpu.memory_space<vmem>>, vector<8x128xf32>,
    } else {
    }
    return
  }
  func.func @transform_0(%arg0: i32, %arg1: i32) -> (i32, i32) {
    %c0_i32 = arith.constant 0 : i32
    %c0_i32_0 = arith.constant 0 : i32
    return %arg0, %c0_i32 : i32, i32
  }
  func.func @transform_1(%arg0: i32, %arg1: i32) -> (i32, i32) {
    %c0_i32 = arith.constant 0 : i32
    %c0_i32_0 = arith.constant 0 : i32
    return %c0_i32, %arg1 : i32, i32
  }
  func.func @transform_2(%arg0: i32, %arg1: i32) -> (i32, i32) {
    %c0_i32 = arith.constant 0 : i32
    %c0_i32_0 = arith.constant 0 : i32
    return %c0_i32, %arg1 : i32, i32
  }
  func.func @transform_3(%arg0: i32, %arg1: i32) -> (i32, i32) {
    %c0_i32 = arith.constant 0 : i32
    %c0_i32_0 = arith.constant 0 : i32
    return %arg0, %c0_i32 : i32, i32
  }
}

</mosaic_0001>

<bundles_post_ra>
// kernel: tpu_custom_call.1
= control target key start
LH: loop header
LB: loop body
LE: loop exit
PB: predicated region body
PF: predicated region fallthrough
CT: control target
= control target key end

     0   :  { %8 = vsyncpa [#allocation4], 0  ;;  %s408_s0 = inlined_call_operand.hbm [shape: f32[8,32], index: 0, kind: input, shape index: {}]   ;;  %s409_s1 = inlined_call_operand.hbm [shape: bf16[32,512], index: 1, kind: input, shape index: {}]   ;;  %s410_s2 = inlined_call_operand.vmem [shape: f32[1,512], index: 2, kind: input, shape index: {}]   ;;  %s411_s3 = inlined_call_operand.hbm [shape: f32[8,128], index: 3, kind: output, shape index: {}]  }
   0x1   :  { %9 = vsyncpa [#allocation7], 0 }
   0x2   :  { %10 = vsyncpa [#allocation5], 0  ;;  %s336_s12 = smov [#allocation3]   ;;  %s337_s14 = smov [#allocation6]  }
   0x3   :  { %s17_s13 = sshll.u32 %s336_s12, 4  ;;  %s26_s15 = sshll.u32 %s337_s14, 4  ;;  %s18_s13 = int_to_ptr.vmem [resolvable:$true] %s17_s13  ;;  %s362_s15 = int_to_ptr.vmem [resolvable:$true] %s26_s15 }
   0x4   :  { %s264_s18 = scalar_lea.hbm %s408_s0, 128 }
   0x5   :  { %p265_p0 = scmp.ne.s32.totalorder %s408_s0, %s264_s18  ;;  %p268_p1 = scmp.lt.u32.totalorder %s264_s18, %s408_s0 }
   0x7   :  { %p270_p2 = pnand %p268_p1, %p265_p0 }
   0x9   :  { %273 = shalt.err (!%p270_p2)
}
   0xa   :  { %s274_s23 = scalar_lea.vmem %s18_s13, 128  ;;  %p279_p4 = scmp.lt.s32.totalorder %s18_s13, %s18_s13 }
   0xb   :  { %p275_p3 = scmp.ne.s32.totalorder %s18_s13, %s274_s23  ;;  %p280_p5 = scmp.lt.s32.totalorder %s274_s23, %s274_s23 }
   0xd   :  { %p281_p6 = por %p280_p5, %p279_p4 }
   0xf   :  { %p282_p7 = pnand %p281_p6, %p275_p3 }
  0x11   :  { %285 = shalt.err (!%p282_p7)
}
  0x12   :  { %20 = dma.hbm_to_vmem [thread:$0]  %s408_s0, 128, %s18_s13, [#allocation4]  }
  0x13   :  { %s286_s28 = scalar_lea.hbm %s409_s1, 1024 }
  0x14   :  { %p287_p8 = scmp.ne.s32.totalorder %s409_s1, %s286_s28  ;;  %p290_p9 = scmp.lt.u32.totalorder %s286_s28, %s409_s1 }
  0x16   :  { %p292_p10 = pnand %p290_p9, %p287_p8 }
  0x18   :  { %295 = shalt.err (!%p292_p10)
}
  0x19   :  { %s296_s6 = scalar_lea.vmem %s362_s15, 1024  ;;  %p301_p12 = scmp.lt.s32.totalorder %s362_s15, %s362_s15 }
  0x1a   :  { %p297_p11 = scmp.ne.s32.totalorder %s362_s15, %s296_s6  ;;  %p302_p13 = scmp.lt.s32.totalorder %s296_s6, %s296_s6 }
  0x1c   :  { %p303_p0 = por %p302_p13, %p301_p12 }
  0x1e   :  { %p304_p1 = pnand %p303_p0, %p297_p11 }
  0x20   :  { %307 = shalt.err (!%p304_p1)
}
  0x21   :  { %s338_s0 = smov 256   ;;  %s339_s7 = smov 16  }
  0x22   :  { %32 = dma.hbm_to_vmem [thread:$0]  %s409_s1, 1024, %s362_s15, [#allocation7], %s338_s0, %s338_s0, %s339_s7  }
  0x23   :  { %330 = dma.done.wait [#allocation4], 128  }
  0x24   :  { %331 = vsyncadd [#allocation4], 4294967168 }
  0x25   :  { %332 = dma.done.wait [#allocation7], 1024  }
  0x26   :  { %333 = vsyncadd [#allocation7], 4294966272  ;;  %v340_v0 = vmov 0   ;;  %v252_v1 = vld [vmem:[#allocation6 + $0x4] ss:$16 sps:$4 sm:$0xff]   ;;  %v42_v9 = vld [vmem:[#allocation3] sm:$0xff]  ;;  %v54_v11 = vlaneseq }
  0x27   :  { %150 = vmatprep.mubr.bf16.mxu0 %v340_v0  ;;  %191 = vmatprep.mubr.bf16.mxu1 %v340_v0  ;;  %v254_v2 = vld [vmem:[#allocation6 + $0xc] ss:$16 sps:$4 sm:$0xff]   ;;  %v256_v3 = vld [vmem:[#allocation6] ss:$16 sps:$4 sm:$0xff]   ;;  %v257_v4 = vld [vmem:[#allocation6 + $0x8] ss:$16 sps:$4 sm:$0xff]   ;;  %v43_v10 = vpack.c.bf16 %v42_v9, %v42_v9 }
  0x28   :  { %118 = vmatprep.subr.bf16.mxu0 %v252_v1  ;;  %159 = vmatprep.subr.bf16.mxu1 %v254_v2  ;;  %v258_v5 = vld [vmem:[#allocation6 + $0x24] ss:$16 sps:$4 sm:$0xff]   ;;  %v260_v6 = vld [vmem:[#allocation6 + $0x2c] ss:$16 sps:$4 sm:$0xff]   ;;  %v262_v7 = vld [vmem:[#allocation6 + $0x20] ss:$16 sps:$4 sm:$0xff]  }
  0x29   :  { %119 = vmatpush1.bf16.msra.mxu0 %v256_v3  ;;  %160 = vmatpush1.bf16.msra.mxu1 %v257_v4  ;;  %v263_v8 = vld [vmem:[#allocation6 + $0x28] ss:$16 sps:$4 sm:$0xff]   ;;  %vm114_vm0 = vcmask 261120   ;;  %v55_v12 = vshrl.u32 %v54_v11, 7 }
  0x2a   :  { %120 = vmatprep.subr.bf16.mxu0 %v258_v5  ;;  %161 = vmatprep.subr.bf16.mxu1 %v260_v6  ;;  %v52_v14 = vld [vmem:[%s410_s2] sm:$0xf]  ;;  %s341_s2 = smov [#allocation8]  }
  0x2b   :  { %v56_v13 = vsub.s32 0, %v55_v12  ;;  %v64_v15 = vsub.s32 2, %v55_v12  ;;  %v60_v16 = vsub.s32 1, %v55_v12  ;;  %v68_v20 = vsub.s32 3, %v55_v12  ;;  %s226_s11 = sshll.u32 %s341_s2, 4  ;;  %s227_s11 = int_to_ptr.vmem [resolvable:$true] %s226_s11 }
  0x2c   :  { %s308_s12 = scalar_lea.vmem %s227_s11, 128  ;;  %p313_p3 = scmp.lt.s32.totalorder %s227_s11, %s227_s11 }
  0x2d   :  { %121 = vmatpush1.bf16.msra.mxu0 %v262_v7  ;;  %162 = vmatpush1.bf16.msra.mxu1 %v263_v8  ;;  %v57_v17 = vrot.slane %v52_v14, %v56_v13  ;;  %v65_v18 = vrot.slane %v52_v14, %v64_v15  ;;  %v61_v19 = vrot.slane %v52_v14, %v60_v16  ;;  %p309_p2 = scmp.ne.s32.totalorder %s227_s11, %s308_s12  ;;  %p314_p4 = scmp.lt.s32.totalorder %s308_s12, %s308_s12 }
  0x2e   :  { %v69_v28 = vrot.slane %v52_v14, %v68_v20 }
  0x2f   :  { %p315_p5 = por %p314_p4, %p313_p3 }
  0x30   :  { %244 = vmatmul.mubr.msk.bf16.vlgmr.msra.gmra.mrb[0].mxu0 %vm114_vm0, %v43_v10  ;;  %245 = vmatmul.mubr.msk.bf16.vlgmr.msra.gmra.mrb[0].mxu1 %vm114_vm0, %v43_v10 }
  0x31   :  { %p316_p6 = pnand %p315_p5, %p309_p2 }
 0x103   :  { %v152_v21 = vpop.f32.mrb[0].mxu0  ;;  %v193_v22 = vpop.f32.mrb[0].mxu1 }
 0x104   :  { %v153_v23 = vadd.f32 %v152_v21, %v57_v17  ;;  %v154_v24 = vpop.f32.mrb[1].mxu0  ;;  %v195_v25 = vpop.f32.mrb[1].mxu1  ;;  %v194_v26 = vadd.f32 %v193_v22, %v65_v18 }
 0x105   :  { %v155_v27 = vadd.f32 %v154_v24, %v61_v19  ;;  %v156_v29 = vpop.f32.mrb[2].mxu0  ;;  %v197_v30 = vpop.f32.mrb[2].mxu1  ;;  %v196_v34 = vadd.f32 %v195_v25, %v69_v28 }
 0x106   :  { %v157_v31 = vpop.f32.mrb[3].mxu0  ;;  %v198_v32 = vpop.f32.mrb[3].mxu1 }
 0x107   :  { %v200_v33 = vmax.f32 %v153_v23, %v155_v27 }
 0x109   :  { %v201_v35 = vmax.f32 %v200_v33, %v194_v26 }
 0x10b   :  { %v202_v36 = vmax.f32 %v201_v35, %v196_v34 }
 0x10d   :  { %219 = vst [vmem:[#allocation8] sm:$0xff] %v202_v36 }
 0x10e   :  { %319 = shalt.err (!%p316_p6)
}
 0x10f   :  { %s320_s15 = scalar_lea.hbm %s411_s3, 128 }
 0x110   :  { %p321_p7 = scmp.ne.s32.totalorder %s411_s3, %s320_s15  ;;  %p324_p8 = scmp.lt.u32.totalorder %s320_s15, %s411_s3 }
 0x112   :  { %p326_p9 = pnand %p324_p8, %p321_p7 }
 0x114   :  { %329 = shalt.err (!%p326_p9)
}
 0x115   :  { %229 = dma.vmem_to_hbm [thread:$0]  %s227_s11, 128, %s411_s3, [#allocation5]  }
 0x116   :  { %334 = dma.done.wait [#allocation5], 128  }
 0x117   :  { %335 = vsyncadd [#allocation5], 4294967168 }
 0x118   :  { %233 = vsyncpa [#allocation4], 1 }
 0x119   :  { %234 = vsyncpa [#allocation7], 1 }
 0x11a   :  { %235 = vsyncpa [#allocation5], 1 }

</bundles_post_ra>
